<compile_context>
chip_gen: v6e
topology: v6e:2x2x1
jax: 0.10.0
libtpu: 0.0.40
codegen_flags: <defaults>
</compile_context>

<pallas_src>
import jax
import jax.numpy as jnp
from jax.experimental import pallas as pl
from jax.experimental.pallas import tpu as pltpu

_SMOOTH = 1.0
_LANES = 128
_CHUNK_ROWS = 1024  # in-kernel reduction chunk (bounds VMEM temps to ~0.5 MiB)


def _pick_tile_rows(rows: int, itemsize: int) -> int:
    """Largest row tile whose double-buffered inputs fit the VMEM budget."""
    # ~16 MiB of pipelined input VMEM (2 inputs x 2 pipeline buffers); on a
    # small-VMEM chip (v7x: 64 MiB per TC) cap inputs at 1/4 of physical VMEM.
    budget = 16 * 1024 * 1024
    try:  # generation-aware but never fatal
        vmem = int(pltpu.get_tpu_info().vmem_capacity_bytes)
        budget = min(budget, vmem // 4)
    except Exception:
        pass
    max_rows = budget // (4 * itemsize * _LANES)  # 2 inputs x 2 buffers
    max_rows = max(_CHUNK_ROWS, (max_rows // _CHUNK_ROWS) * _CHUNK_ROWS)
    if rows <= max_rows:
        return rows  # single full-extent block (exempt from the 8-divisibility rule)
    return max_rows


def _make_dice_kernel(tile_rows: int, rows_total: int, steps: int,
                      mask_from_blk, chunk_rows: int):
    """Kernel accumulating [intersection ; pred+target] partial sums.

    Resident output block per shard: (1, 16, 128) f32
      rows 0..7  : running (8,128) partial sums of pred * target
      rows 8..15 : running (8,128) partial sums of pred + target
    """
    num_chunks = tile_rows // chunk_rows
    assert num_chunks * chunk_rows == tile_rows

    def _chunk_sums(p, t):
        inter = p * t
        combo = p + t
        if chunk_rows % 8 == 0:
            inter8 = inter.reshape(-1, 8, _LANES).sum(axis=0)
            combo8 = combo.reshape(-1, 8, _LANES).sum(axis=0)
        else:
            # Tiny single-block fallback (rows < budget and not a multiple of 8).
            z = jnp.zeros((7, _LANES), jnp.float32)
            inter8 = jnp.concatenate([inter.sum(axis=0, keepdims=True), z], axis=0)
            combo8 = jnp.concatenate([combo.sum(axis=0, keepdims=True), z], axis=0)
        return jnp.concatenate([inter8, combo8], axis=0)  # (16, 128)

    def _block_sums(p_ref, t_ref, blk, masked):
        def chunk(c):
            start = pl.multiple_of(c * chunk_rows, chunk_rows)
            p = p_ref[pl.ds(start, chunk_rows), :].astype(jnp.float32)
            t = t_ref[pl.ds(start, chunk_rows), :].astype(jnp.float32)
            if masked:
                # Mask BEFORE any arithmetic so OOB garbage (NaN/Inf) in the
                # partial / phantom block can never reach the accumulator.
                row0 = blk * tile_rows + c * chunk_rows
                rid = row0 + jax.lax.broadcasted_iota(jnp.int32, p.shape, 0)
                valid = rid < rows_total
                p = jnp.where(valid, p, 0.0)
                t = jnp.where(valid, t, 0.0)
            return _chunk_sums(p, t)

        return jax.lax.fori_loop(
            0, num_chunks, lambda c, acc: acc + chunk(c),
            jnp.zeros((16, _LANES), jnp.float32), unroll=True)

    def kernel(p_ref, t_ref, out_ref):
        k = pl.program_id(1)

        @pl.when(k == 0)
        def _init():
            out_ref[...] = jnp.zeros_like(out_ref)

        if mask_from_blk is None:
            out_ref[...] = out_ref[...] + _block_sums(p_ref, t_ref, 0, False)[None]
        else:
            blk = pl.program_id(0) * steps + k

            @pl.when(blk < mask_from_blk)      # hot path: no mask work at all
            def _full():
                out_ref[...] = (out_ref[...]
                                + _block_sums(p_ref, t_ref, blk, False)[None])

            @pl.when(blk >= mask_from_blk)     # partial and/or phantom block
            def _edge():
                out_ref[...] = (out_ref[...]
                                + _block_sums(p_ref, t_ref, blk, True)[None])

    return kernel


def dice_coefficient(pred: jax.Array, target: jax.Array) -> jax.Array:
    """Pallas equivalent of DiceCoefficient.forward(pred, target)."""
    assert pred.shape == target.shape, "pred/target must have identical shapes"

    p_flat = pred.reshape(-1)
    t_flat = target.reshape(-1)
    n = p_flat.shape[0]

    if n == 0:
        # Matches the torch module: (0 + smooth) / (0 + smooth) = 1.0
        return jnp.asarray(1.0, dtype=jnp.float32)

    # Lane tail (< 128 elements) is reduced with plain jnp in the wrapper
    # instead of jnp.pad-ing full HBM copies of both inputs.
    rem = n % _LANES
    n_main = n - rem
    inter_tail = jnp.float32(0.0)
    combo_tail = jnp.float32(0.0)
    if rem:
        pt = p_flat[n_main:].astype(jnp.float32)
        tt = t_flat[n_main:].astype(jnp.float32)
        inter_tail = jnp.sum(pt * tt)
        combo_tail = jnp.sum(pt) + jnp.sum(tt)

    if n_main == 0:
        return (2.0 * inter_tail + _SMOOTH) / (combo_tail + _SMOOTH)

    rows = n_main // _LANES
    p_main = p_flat if rem == 0 else p_flat[:n_main]
    t_main = t_flat if rem == 0 else t_flat[:n_main]
    p2d = p_main.reshape(rows, _LANES)
    t2d = t_main.reshape(rows, _LANES)

    isz_p = jnp.dtype(p2d.dtype).itemsize
    isz_t = jnp.dtype(t2d.dtype).itemsize
    tile_rows = _pick_tile_rows(rows, max(isz_p, isz_t))
    nblocks = (rows + tile_rows - 1) // tile_rows
    if tile_rows % 8 != 0:
        assert nblocks == 1  # fallback reduce path is only valid single-block

    chunk_rows = _CHUNK_ROWS if tile_rows % _CHUNK_ROWS == 0 else tile_rows

    # Always split over both TensorCores (v7x megacore) when >= 2 blocks; an
    # odd block count gets one phantom block that is clamped + fully masked.
    n_shards = 2 if nblocks >= 2 else 1
    steps = (nblocks + n_shards - 1) // n_shards
    has_partial = (rows % tile_rows) != 0
    has_phantom = n_shards * steps > nblocks
    if has_partial:
        mask_from_blk = nblocks - 1
    elif has_phantom:
        mask_from_blk = nblocks
    else:
        mask_from_blk = None

    last_blk = nblocks - 1
    if has_phantom:
        def in_index(s, k):
            return (jnp.minimum(s * steps + k, last_blk), 0)
    else:
        def in_index(s, k):
            return (s * steps + k, 0)

    in_spec = pl.BlockSpec((tile_rows, _LANES), in_index)
    out_spec = pl.BlockSpec((1, 16, _LANES), lambda s, k: (s, 0, 0))

    kernel = _make_dice_kernel(tile_rows, rows, steps, mask_from_blk, chunk_rows)

    # 2 pipeline buffers per input; generous headroom for chunk temps/output.
    input_vmem = 2 * tile_rows * _LANES * (isz_p + isz_t)
    vmem_limit = int(input_vmem + (16 << 20))

    cost = pl.CostEstimate(
        flops=4 * n_main,
        transcendentals=0,
        bytes_accessed=int(n_main * (isz_p + isz_t) + n_shards * 16 * _LANES * 4),
    )

    partials = pl.pallas_call(
        kernel,
        out_shape=jax.ShapeDtypeStruct((n_shards, 16, _LANES), jnp.float32),
        grid_spec=pltpu.PrefetchScalarGridSpec(
            num_scalar_prefetch=0,
            grid=(n_shards, steps),
            in_specs=[in_spec, in_spec],
            out_specs=out_spec,
        ),
        compiler_params=pltpu.CompilerParams(
            dimension_semantics=("parallel", "arbitrary"),
            vmem_limit_bytes=vmem_limit,
        ),
        cost_estimate=cost,
    )(p2d, t2d)

    # Single cross-lane reduction of the tiny partial-sum slab + final divide.
    intersection = jnp.sum(partials[:, :8, :]) + inter_tail
    denom = jnp.sum(partials[:, 8:, :]) + combo_tail  # == sum(pred) + sum(target)
    return (2.0 * intersection + _SMOOTH) / (denom + _SMOOTH)


def _reference(pred, target):
    iflat = pred.reshape(-1).astype(jnp.float32)
    tflat = target.reshape(-1).astype(jnp.float32)
    inter = jnp.sum(iflat * tflat)
    return (2.0 * inter + _SMOOTH) / (jnp.sum(iflat) + jnp.sum(tflat) + _SMOOTH)


def _make_inputs(key, shape, dtype):
    kp, kt = jax.random.split(key)
    pred = jax.nn.sigmoid(jax.random.normal(kp, shape, dtype=jnp.float32)).astype(dtype)
    target = (jax.random.uniform(kt, shape) > 0.5).astype(dtype)
    return pred, target


if __name__ == "__main__":
    keys = jax.random.split(jax.random.PRNGKey(0), 4)

    # 1) Small segmentation-style input (single block, multiple-of-8 rows).
    pred, target = _make_inputs(keys[0], (2, 4, 16, 16), jnp.float32)
    dice = dice_coefficient(pred, target)
    jax.block_until_ready(dice)
    ref = _reference(pred, target)
    assert jnp.allclose(dice, ref, rtol=1e-5, atol=1e-6), (dice, ref)

    # 2) Multi-block input: rows = 20480 -> with 8192-row tiles that is 3 blocks,
    #    exercising the 2-way TensorCore shard, the masked partial last block and
    #    the clamped+masked phantom block (odd block count).
    pred2, target2 = _make_inputs(keys[1], (5, 4, 512, 256), jnp.float32)
    dice2 = dice_coefficient(pred2, target2)
    jax.block_until_ready(dice2)
    ref2 = _reference(pred2, target2)
    assert jnp.allclose(dice2, ref2, rtol=1e-4, atol=1e-6), (dice2, ref2)

    # 3) Odd element count (not a multiple of 128): wrapper-side lane tail plus
    #    the tiny single-block non-multiple-of-8 reduce path.
    pred3, target3 = _make_inputs(keys[2], (3, 7, 11), jnp.float32)
    dice3 = dice_coefficient(pred3, target3)
    jax.block_until_ready(dice3)
    ref3 = _reference(pred3, target3)
    assert jnp.allclose(dice3, ref3, rtol=1e-5, atol=1e-6), (dice3, ref3)

    # 4) Native bf16 streaming with in-kernel f32 accumulation.
    pred4, target4 = _make_inputs(keys[3], (2, 4, 16, 16), jnp.bfloat16)
    dice4 = dice_coefficient(pred4, target4)
    jax.block_until_ready(dice4)
    ref4 = _reference(pred4, target4)
    assert jnp.allclose(dice4, ref4, rtol=1e-4, atol=1e-5), (dice4, ref4)

    print("KERNEL_OK")
</pallas_src>

<mosaic_0001>
module attributes {stable_mosaic.version = 11 : i64} {
  func.func @kernel(%arg0: i32, %arg1: i32, %arg2: memref<16x128xf32, #tpu.memory_space<vmem>>, %arg3: memref<16x128xf32, #tpu.memory_space<vmem>>, %arg4: memref<1x16x128xf32, #tpu.memory_space<vmem>>) attributes {dimension_semantics = [#tpu.dimension_semantics<parallel>, #tpu.dimension_semantics<arbitrary>], iteration_bounds = array<i64: 1, 1>, scalar_prefetch = 0 : i64, scratch_operands = 0 : i64, tpu.core_type = #tpu.core_type<tc>, window_params = [{transform_indices = @transform_0, window_bounds = array<i64: 16, 128>}, {transform_indices = @transform_1, window_bounds = array<i64: 16, 128>}, {transform_indices = @transform_2, window_bounds = array<i64: 1, 16, 128>}]} {
    %c0_i32 = arith.constant 0 : i32
    %0 = arith.cmpi eq, %arg1, %c0_i32 : i32
    %1 = arith.extui %0 : i1 to i32
    %c0_i32_0 = arith.constant 0 : i32
    %2 = arith.cmpi ne, %1, %c0_i32_0 : i32
    scf.if %2 {
      %cst_11 = arith.constant 0.000000e+00 : f32
      %22 = vector.broadcast %cst_11 : f32 to vector<1x16x128xf32>
      %c0_12 = arith.constant 0 : index
      %c0_13 = arith.constant 0 : index
      %c0_14 = arith.constant 0 : index
      %23 = vector.load %arg4[%c0_12, %c0_13, %c0_14] : memref<1x16x128xf32, #tpu.memory_space<vmem>>, vector<1x16x128xf32>
      tpu.vector_store %arg4[%c0_12, %c0_13, %c0_14], %22 {strides = array<i32>} : memref<1x16x128xf32, #tpu.memory_space<vmem>>, vector<1x16x128xf32>,
    } else {
    }
    %c0 = arith.constant 0 : index
    %c0_1 = arith.constant 0 : index
    %c0_2 = arith.constant 0 : index
    %3 = vector.load %arg4[%c0, %c0_1, %c0_2] : memref<1x16x128xf32, #tpu.memory_space<vmem>>, vector<1x16x128xf32>
    %cst = arith.constant 0.000000e+00 : f32
    %4 = vector.broadcast %cst : f32 to vector<16x128xf32>
    %c0_i32_3 = arith.constant 0 : i32
    %c16_i32 = arith.constant 16 : i32
    %5 = arith.muli %c0_i32_3, %c16_i32 : i32
    %6 = tpu.assume_multiple %5, 16 : i32
    %7 = arith.index_cast %6 : i32 to index
    %c0_4 = arith.constant 0 : index
    %8 = vector.load %arg2[%7, %c0_4] : memref<16x128xf32, #tpu.memory_space<vmem>>, vector<16x128xf32>
    %9 = arith.index_cast %6 : i32 to index
    %c0_5 = arith.constant 0 : index
    %10 = vector.load %arg3[%9, %c0_5] : memref<16x128xf32, #tpu.memory_space<vmem>>, vector<16x128xf32>
    %11 = arith.mulf %8, %10 : vector<16x128xf32>
    %12 = arith.addf %8, %10 : vector<16x128xf32>
    %13 = vector.shape_cast %11 : vector<16x128xf32> to vector<2x8x128xf32>
    %cst_6 = arith.constant dense<0.000000e+00> : vector<8x128xf32>
    %14 = vector.multi_reduction <add>, %13, %cst_6 [0] : vector<2x8x128xf32> to vector<8x128xf32>
    %15 = vector.shape_cast %12 : vector<16x128xf32> to vector<2x8x128xf32>
    %cst_7 = arith.constant dense<0.000000e+00> : vector<8x128xf32>
    %16 = vector.multi_reduction <add>, %15, %cst_7 [0] : vector<2x8x128xf32> to vector<8x128xf32>
    %17 = tpu.concatenate %14, %16 in 0 : vector<8x128xf32>, vector<8x128xf32> -> vector<16x128xf32>
    %18 = arith.addf %4, %17 : vector<16x128xf32>
    %c1_i32 = arith.constant 1 : i32
    %19 = vector.shape_cast %18 : vector<16x128xf32> to vector<1x16x128xf32>
    %20 = arith.addf %3, %19 : vector<1x16x128xf32>
    %c0_8 = arith.constant 0 : index
    %c0_9 = arith.constant 0 : index
    %c0_10 = arith.constant 0 : index
    %21 = vector.load %arg4[%c0_8, %c0_9, %c0_10] : memref<1x16x128xf32, #tpu.memory_space<vmem>>, vector<1x16x128xf32>
    tpu.vector_store %arg4[%c0_8, %c0_9, %c0_10], %20 {strides = array<i32>} : memref<1x16x128xf32, #tpu.memory_space<vmem>>, vector<1x16x128xf32>,
    return
  }
  func.func @transform_0(%arg0: i32, %arg1: i32) -> (i32, i32) {
    %c1_i32 = arith.constant 1 : i32
    %0 = arith.muli %arg0, %c1_i32 : i32
    %1 = arith.addi %0, %arg1 : i32
    %c0_i32 = arith.constant 0 : i32
    %c0_i32_0 = arith.constant 0 : i32
    return %1, %c0_i32 : i32, i32
  }
  func.func @transform_1(%arg0: i32, %arg1: i32) -> (i32, i32) {
    %c1_i32 = arith.constant 1 : i32
    %0 = arith.muli %arg0, %c1_i32 : i32
    %1 = arith.addi %0, %arg1 : i32
    %c0_i32 = arith.constant 0 : i32
    %c0_i32_0 = arith.constant 0 : i32
    return %1, %c0_i32 : i32, i32
  }
  func.func @transform_2(%arg0: i32, %arg1: i32) -> (i32, i32, i32) {
    %c0_i32 = arith.constant 0 : i32
    %c0_i32_0 = arith.constant 0 : i32
    %c0_i32_1 = arith.constant 0 : i32
    return %arg0, %c0_i32, %c0_i32_0 : i32, i32, i32
  }
}

</mosaic_0001>

<bundles_post_ra>
// kernel: tpu_custom_call.1
= control target key start
LH: loop header
LB: loop body
LE: loop exit
PB: predicated region body
PF: predicated region fallthrough
CT: control target
= control target key end

     0   :  { %7 = vsyncpa [#allocation3], 0  ;;  %s204_s0 = inlined_call_operand.hbm [shape: f32[16,128], index: 0, kind: input, shape index: {}]   ;;  %s205_s1 = inlined_call_operand.hbm [shape: f32[16,128], index: 1, kind: input, shape index: {}]   ;;  %s206_s2 = inlined_call_operand.hbm [shape: f32[1,16,128], index: 2, kind: output, shape index: {}]  }
   0x1   :  { %8 = vsyncpa [#allocation6], 0 }
   0x2   :  { %9 = vsyncpa [#allocation4], 0  ;;  %s166_s9 = smov [#allocation2]  }
   0x3   :  { %s19_s10 = sshll.u32 %s166_s9, 4  ;;  %s20_s10 = int_to_ptr.vmem [resolvable:$true] %s19_s10 }
   0x4   :  { %s108_s11 = scalar_lea.vmem %s20_s10, 256  ;;  %p113_p1 = scmp.lt.s32.totalorder %s20_s10, %s20_s10 }
   0x5   :  { %p109_p0 = scmp.ne.s32.totalorder %s20_s10, %s108_s11  ;;  %p114_p2 = scmp.lt.s32.totalorder %s108_s11, %s108_s11 }
   0x7   :  { %p115_p3 = por %p114_p2, %p113_p1 }
   0x9   :  { %p116_p4 = pnand %p115_p3, %p109_p0 }
   0xb   :  { %119 = shalt.err (!%p116_p4)
}
   0xc   :  { %s167_s12 = smov 128   ;;  %s168_s13 = smov 8  }
   0xd   :  { %25 = dma.hbm_to_vmem [thread:$0]  %s204_s0, 256, %s20_s10, [#allocation3], %s167_s12, %s167_s12, %s168_s13  }
   0xe   :  { %s169_s16 = smov [#allocation5]  }
   0xf   :  { %s35_s17 = sshll.u32 %s169_s16, 4  ;;  %s36_s17 = int_to_ptr.vmem [resolvable:$true] %s35_s17 }
  0x10   :  { %s128_s18 = scalar_lea.vmem %s36_s17, 256  ;;  %p133_p6 = scmp.lt.s32.totalorder %s36_s17, %s36_s17 }
  0x11   :  { %p129_p5 = scmp.ne.s32.totalorder %s36_s17, %s128_s18  ;;  %p134_p7 = scmp.lt.s32.totalorder %s128_s18, %s128_s18 }
  0x13   :  { %p135_p8 = por %p134_p7, %p133_p6 }
  0x15   :  { %p136_p9 = pnand %p135_p8, %p129_p5 }
  0x17   :  { %139 = shalt.err (!%p136_p9)
}
  0x18   :  { %41 = dma.hbm_to_vmem [thread:$0]  %s205_s1, 256, %s36_s17, [#allocation6], %s167_s12, %s167_s12, %s168_s13  }
  0x19   :  { %160 = dma.done.wait [#allocation3], 256  }
  0x1a   :  { %161 = vsyncadd [#allocation3], 4294967040 }
  0x1b   :  { %162 = dma.done.wait [#allocation6], 256  }
  0x1c   :  { %163 = vsyncadd [#allocation6], 4294967040  ;;  %v60_v0 = vld [vmem:[#allocation2] sm:$0xff]  ;;  %v61_v1 = vld [vmem:[#allocation2 + $0x8] sm:$0xff]  ;;  %s170_s0 = smov [#allocation7]  }
  0x1d   :  { %v62_v2 = vld [vmem:[#allocation5] sm:$0xff]  ;;  %v63_v3 = vld [vmem:[#allocation5 + $0x8] sm:$0xff]  ;;  %s81_s21 = sshll.u32 %s170_s0, 4  ;;  %s82_s21 = int_to_ptr.vmem [resolvable:$true] %s81_s21 }
  0x1e   :  { %v64_v4 = vmul.f32 %v62_v2, %v60_v0  ;;  %v66_v5 = vadd.f32 %v62_v2, %v60_v0  ;;  %v65_v6 = vmul.f32 %v63_v3, %v61_v1  ;;  %v67_v7 = vadd.f32 %v63_v3, %v61_v1  ;;  %s140_s1 = scalar_lea.vmem %s82_s21, 256  ;;  %p145_p11 = scmp.lt.s32.totalorder %s82_s21, %s82_s21 }
  0x1f   :  { %p141_p10 = scmp.ne.s32.totalorder %s82_s21, %s140_s1  ;;  %p146_p12 = scmp.lt.s32.totalorder %s140_s1, %s140_s1 }
  0x20   :  { %v68_v8 = vadd.f32 %v65_v6, %v64_v4  ;;  %v69_v9 = vadd.f32 %v67_v7, %v66_v5 }
  0x21   :  { %p147_p13 = por %p146_p12, %p145_p11 }
  0x22   :  { %74 = vst [vmem:[#allocation7] sm:$0xff] %v68_v8  ;;  %75 = vst [vmem:[#allocation7 + $0x8] sm:$0xff] %v69_v9 }
  0x23   :  { %p148_p0 = pnand %p147_p13, %p141_p10 }
  0x25   :  { %151 = shalt.err (!%p148_p0)
}
  0x26   :  { %87 = dma.vmem_to_hbm [thread:$0]  %s82_s21, 256, %s206_s2, [#allocation4], %s167_s12, %s167_s12, %s168_s13  }
  0x27   :  { %164 = dma.done.wait [#allocation4], 256  }
  0x28   :  { %165 = vsyncadd [#allocation4], 4294967040 }
  0x29   :  { %91 = vsyncpa [#allocation3], 1 }
  0x2a   :  { %92 = vsyncpa [#allocation6], 1 }
  0x2b   :  { %93 = vsyncpa [#allocation4], 1 }

</bundles_post_ra>
